<compile_context>
chip_gen: v5e
topology: v5e:2x2
jax: 0.10.0
libtpu: 0.0.40
codegen_flags: <defaults>
</compile_context>

<pallas_src>
import jax
import jax.numpy as jnp
from jax.experimental import pallas as pl
from jax.experimental.pallas import tpu as pltpu


# ----------------------------------------------------------------------------
# Pallas kernels (shared by both spatial views; blocks are (bn, C, tr, tl))
# ----------------------------------------------------------------------------
def _argmax_channel_kernel(logits_ref, out_ref):
    """Non-ordinal path: argmax over channel axis, first-max-wins.

    argmax(softmax(x, C)) == argmax(x, C), so softmax is dropped entirely.

    logits_ref: (bn, C, tr, tl) native dtype
    out_ref   : (bn, tr, tl)    out dtype (int32 by default)
    """
    c = logits_ref.shape[1]
    best_val = logits_ref[:, 0, :, :]                    # (bn, tr, tl)
    best_idx = jnp.zeros(best_val.shape, dtype=jnp.int32)
    # C is small and static: an unrolled VPU loop over full lane/sublane-dense
    # vregs (no cross-sublane XLU reduce).
    for ch in range(1, c):
        v = logits_ref[:, ch, :, :]
        take = v > best_val                              # strict '>' keeps first occurrence
        best_val = jnp.where(take, v, best_val)
        best_idx = jnp.where(take, jnp.int32(ch), best_idx)
    out_ref[...] = best_idx.astype(out_ref.dtype)


def _ordinal_count_kernel(logits_ref, out_ref):
    """Ordinal path: count(sigmoid(x) > 0.5) == count(x > 0) over channels.

    logits_ref: (bn, C, tr, tl) native dtype
    out_ref   : (bn, tr, tl)    out dtype (int32 by default)
    """
    c = logits_ref.shape[1]
    acc = (logits_ref[:, 0, :, :] > 0).astype(jnp.int32)
    for ch in range(1, c):
        acc = acc + (logits_ref[:, ch, :, :] > 0).astype(jnp.int32)
    out_ref[...] = acc.astype(out_ref.dtype)


# ----------------------------------------------------------------------------
# Tiling heuristics (generation-aware) + pallas_call wrapper
# ----------------------------------------------------------------------------
_MAX_LANE_TILE = 4096          # lane-tile cap (multiple of 128) when lanes must be split
_IN_BLOCK_TARGET = 8 << 20     # ~8 MiB input blocks => >90% of HBM roofline


def _vmem_capacity_bytes():
    """Physical VMEM of the current generation (64 MiB v7x, 128 MiB v5e/v6e)."""
    try:
        return int(pltpu.get_tpu_info().vmem_capacity_bytes)
    except Exception:
        return 64 << 20        # assume the smallest generation if the query fails


def _spatial_view(h, w):
    """(rows, lanes) view of the flattened spatial extent.

    Prefer a lane extent that is a multiple of 128 so every block is a
    contiguous per-channel HBM run and output stores are unmasked; fall back
    to the native (H, W) view otherwise (full-extent blocks, still correct).
    """
    s = h * w
    if s % 128 == 0:
        for lanes in (2048, 1024, 512, 256, 128):
            if s % lanes == 0:
                return s // lanes, lanes
    return h, w


def _pick_tiles(n, c, rows, lanes, in_itemsize, out_itemsize):
    vmem_cap = _vmem_capacity_bytes()
    total_budget = (vmem_cap * 3) // 4                 # ~48 MiB v7x, ~96 MiB v5e/v6e
    in_target = min(_IN_BLOCK_TARGET, total_budget // 4)

    # Dtype-aware sublane alignment: 8 rows for 4-byte, 16 for 2-byte, 32 for 1-byte.
    align = max(8, 32 // max(1, in_itemsize), 32 // max(1, out_itemsize))

    # Lane tile: prefer the full (contiguous) lane extent; split only when huge.
    tl = lanes if lanes <= _MAX_LANE_TILE else _MAX_LANE_TILE

    # Row tile: largest aligned value keeping 2*(in_block + out_block) within
    # the per-generation budget and the input block near the ~8 MiB target.
    per_row_in = c * tl * in_itemsize
    per_row_out = tl * out_itemsize
    tr_cap = min((total_budget // 2) // max(1, per_row_in + per_row_out),
                 in_target // max(1, per_row_in))
    tr_cap = max(align, (tr_cap // align) * align)
    tr = rows if rows <= tr_cap else tr_cap

    # Generalized batch folding: when one block already covers the whole
    # spatial extent, fold as many images as the same budgets allow.
    bn = 1
    if tr == rows and tl == lanes:
        per_img_in = c * rows * lanes * in_itemsize
        per_img_out = rows * lanes * out_itemsize
        bn = min(n,
                 max(1, (total_budget // 2) // max(1, per_img_in + per_img_out)),
                 max(1, in_target // max(1, per_img_in)))
        bn = max(1, bn)

    # v7x has two TensorCores: keep at least 2 grid steps along a "parallel"
    # axis whenever the problem can be split (harmless on v5e/v6e).
    def grid_size(bn_, tr_):
        return pl.cdiv(n, bn_) * pl.cdiv(rows, tr_) * pl.cdiv(lanes, tl)

    if grid_size(bn, tr) < 2:
        if n >= 2:
            bn = -(-n // 2)                                   # two batch blocks
        elif rows > align:
            half = -(-rows // 2)
            tr = max(align, (-(-half // align)) * align)      # two aligned row blocks
        # else: genuinely tiny problem; a single step is fine.

    return bn, tr, tl


def _run_channel_reduce(kernel, logits_nchw, out_dtype):
    n, c, h, w = logits_nchw.shape
    rows, lanes = _spatial_view(h, w)
    # Free reshape: NCHW is contiguous over (H, W).
    x = logits_nchw.reshape(n, c, rows, lanes)

    in_isz = x.dtype.itemsize
    out_isz = jnp.dtype(out_dtype).itemsize
    bn, tr, tl = _pick_tiles(n, c, rows, lanes, in_isz, out_isz)

    # Raise the scoped-VMEM limit so the larger tiles are accepted, keeping
    # headroom below physical capacity on every generation.
    vmem_cap = _vmem_capacity_bytes()
    in_block = bn * c * tr * tl * in_isz
    out_block = bn * tr * tl * out_isz
    footprint = 2 * (in_block + out_block)                 # double-buffered pipeline
    vmem_limit = int(min(max(footprint + (8 << 20), 32 << 20),
                         max(32 << 20, vmem_cap - (8 << 20))))

    out = pl.pallas_call(
        kernel,
        out_shape=jax.ShapeDtypeStruct((n, rows, lanes), out_dtype),
        grid_spec=pltpu.PrefetchScalarGridSpec(
            num_scalar_prefetch=0,
            grid=(pl.cdiv(n, bn), pl.cdiv(rows, tr), pl.cdiv(lanes, tl)),
            in_specs=[pl.BlockSpec((bn, c, tr, tl), lambda b, i, j: (b, 0, i, j))],
            out_specs=pl.BlockSpec((bn, tr, tl), lambda b, i, j: (b, i, j)),
        ),
        compiler_params=pltpu.CompilerParams(
            dimension_semantics=("parallel", "parallel", "parallel"),
            vmem_limit_bytes=vmem_limit,
        ),
    )(x)
    return out.reshape(n, h, w)


# ----------------------------------------------------------------------------
# JAX/Pallas port of the concrete parts of BaseUNet
# ----------------------------------------------------------------------------
class BaseUNetPallas:
    def __init__(self, in_channel_count: int, num_class: int, img_size: int,
                 name: str = "BaseUNet", is_ordinal: bool = False,
                 mdl_lbl: str = None):
        self.is_ordinal = is_ordinal
        self.in_channel_count = in_channel_count
        self.num_output = num_class - 1 if is_ordinal else num_class
        self.mdl_name = name
        self.mdl_lbl = mdl_lbl
        self.num_class = num_class
        self.img_size = img_size

    # torch.cat([x[k] for k in x], dim=1) — NCHW channel concat (glue).
    def concat_channels(self, x: dict) -> jnp.ndarray:
        return jnp.concatenate([x[k] for k in x], axis=1)

    # BaseUNet has no trainable parameters of dim > 1.
    def calc_model_size(self):
        return 0

    # predict_with_logits — the hot path, in Pallas. Logits are NCHW and are
    # consumed in their native dtype (f32 or bf16).  `out_dtype` may be set to
    # uint8/int16 (num_class <= 255) to cut HBM write traffic when downstream
    # allows it; default int32 matches the previous behavior.
    def predict_with_logits(self, logits: jnp.ndarray,
                            out_dtype=jnp.int32) -> jnp.ndarray:
        if self.is_ordinal:
            return _run_channel_reduce(_ordinal_count_kernel, logits, out_dtype)
        return _run_channel_reduce(_argmax_channel_kernel, logits, out_dtype)


# ----------------------------------------------------------------------------
# Demo / smoke test
# ----------------------------------------------------------------------------
if __name__ == "__main__":
    key = jax.random.PRNGKey(0)
    k1, k2, k3, k4, k5 = jax.random.split(key, 5)

    batch, img_size, num_class = 2, 16, 4

    model = BaseUNetPallas(in_channel_count=4, num_class=num_class,
                           img_size=img_size, is_ordinal=False)
    model_ord = BaseUNetPallas(in_channel_count=4, num_class=num_class,
                               img_size=img_size, is_ordinal=True)

    # concat_channels: dict of NCHW tensors -> concat on channel dim
    x = {
        "mod_a": jax.random.normal(k1, (batch, 2, img_size, img_size), jnp.float32),
        "mod_b": jax.random.normal(k2, (batch, 2, img_size, img_size), jnp.float32),
    }
    cat = model.concat_channels(x)
    assert cat.shape == (batch, 4, img_size, img_size)

    # Non-ordinal (f32): argmax(softmax(logits)) == argmax(logits)
    logits = jax.random.normal(k3, (batch, model.num_output, img_size, img_size),
                               jnp.float32)
    pred = jax.block_until_ready(model.predict_with_logits(logits))
    ref = jnp.argmax(logits, axis=1).astype(jnp.int32)
    assert pred.shape == (batch, img_size, img_size)
    assert pred.dtype == jnp.int32
    assert bool(jnp.all(pred == ref))

    # Non-ordinal (bf16): native-dtype DMA path, no wrapper upcast.
    logits_bf16 = logits.astype(jnp.bfloat16)
    pred_bf16 = jax.block_until_ready(model.predict_with_logits(logits_bf16))
    ref_bf16 = jnp.argmax(logits_bf16, axis=1).astype(jnp.int32)
    assert bool(jnp.all(pred_bf16 == ref_bf16))

    # Ordinal: sum(sigmoid(logits) > 0.5, dim=1) == sum(logits > 0, dim=1)
    logits_ord = jax.random.normal(
        k4, (batch, model_ord.num_output, img_size, img_size), jnp.float32)
    pred_ord = jax.block_until_ready(model_ord.predict_with_logits(logits_ord))
    ref_ord = jnp.sum(logits_ord > 0, axis=1).astype(jnp.int32)
    assert pred_ord.shape == (batch, img_size, img_size)
    assert bool(jnp.all(pred_ord == ref_ord))

    # Odd spatial shape (H*W not a multiple of 128): native-view fallback path.
    model_odd = BaseUNetPallas(in_channel_count=4, num_class=5,
                               img_size=19, is_ordinal=False)
    logits_odd = jax.random.normal(k5, (batch, 5, 19, 24), jnp.float32)
    pred_odd = jax.block_until_ready(model_odd.predict_with_logits(logits_odd))
    ref_odd = jnp.argmax(logits_odd, axis=1).astype(jnp.int32)
    assert pred_odd.shape == (batch, 19, 24)
    assert bool(jnp.all(pred_odd == ref_odd))

    print("KERNEL_OK")
</pallas_src>

<mosaic_0001>
module attributes {stable_mosaic.version = 11 : i64} {
  func.func @_argmax_channel_kernel(%arg0: i32, %arg1: i32, %arg2: i32, %arg3: memref<1x4x1x256xf32, #tpu.memory_space<vmem>>, %arg4: memref<1x1x256xi32, #tpu.memory_space<vmem>>) attributes {dimension_semantics = [#tpu.dimension_semantics<parallel>, #tpu.dimension_semantics<parallel>, #tpu.dimension_semantics<parallel>], iteration_bounds = array<i64: 2, 1, 1>, scalar_prefetch = 0 : i64, scratch_operands = 0 : i64, tpu.core_type = #tpu.core_type<tc>, window_params = [{transform_indices = @transform_0, window_bounds = array<i64: 1, 4, 1, 256>}, {transform_indices = @transform_1, window_bounds = array<i64: 1, 1, 256>}]} {
    %c0 = arith.constant 0 : index
    %c0_0 = arith.constant 0 : index
    %c0_1 = arith.constant 0 : index
    %c0_2 = arith.constant 0 : index
    %0 = vector.load %arg3[%c0, %c0_0, %c0_1, %c0_2] : memref<1x4x1x256xf32, #tpu.memory_space<vmem>>, vector<1x1x1x256xf32>
    %1 = vector.shape_cast %0 : vector<1x1x1x256xf32> to vector<1x1x256xf32>
    %c0_i32 = arith.constant 0 : i32
    %2 = vector.broadcast %c0_i32 : i32 to vector<1x1x256xi32>
    %c0_3 = arith.constant 0 : index
    %c1 = arith.constant 1 : index
    %c0_4 = arith.constant 0 : index
    %c0_5 = arith.constant 0 : index
    %3 = vector.load %arg3[%c0_3, %c1, %c0_4, %c0_5] : memref<1x4x1x256xf32, #tpu.memory_space<vmem>>, vector<1x1x1x256xf32>
    %4 = vector.shape_cast %3 : vector<1x1x1x256xf32> to vector<1x1x256xf32>
    %5 = arith.cmpf ogt, %4, %1 : vector<1x1x256xf32>
    %6 = arith.select %5, %4, %1 : vector<1x1x256xi1>, vector<1x1x256xf32>
    %c1_i32 = arith.constant 1 : i32
    %7 = vector.broadcast %c1_i32 : i32 to vector<1x1x256xi32>
    %8 = arith.select %5, %7, %2 : vector<1x1x256xi1>, vector<1x1x256xi32>
    %c0_6 = arith.constant 0 : index
    %c2 = arith.constant 2 : index
    %c0_7 = arith.constant 0 : index
    %c0_8 = arith.constant 0 : index
    %9 = vector.load %arg3[%c0_6, %c2, %c0_7, %c0_8] : memref<1x4x1x256xf32, #tpu.memory_space<vmem>>, vector<1x1x1x256xf32>
    %10 = vector.shape_cast %9 : vector<1x1x1x256xf32> to vector<1x1x256xf32>
    %11 = arith.cmpf ogt, %10, %6 : vector<1x1x256xf32>
    %12 = arith.select %11, %10, %6 : vector<1x1x256xi1>, vector<1x1x256xf32>
    %c2_i32 = arith.constant 2 : i32
    %13 = vector.broadcast %c2_i32 : i32 to vector<1x1x256xi32>
    %14 = arith.select %11, %13, %8 : vector<1x1x256xi1>, vector<1x1x256xi32>
    %c0_9 = arith.constant 0 : index
    %c3 = arith.constant 3 : index
    %c0_10 = arith.constant 0 : index
    %c0_11 = arith.constant 0 : index
    %15 = vector.load %arg3[%c0_9, %c3, %c0_10, %c0_11] : memref<1x4x1x256xf32, #tpu.memory_space<vmem>>, vector<1x1x1x256xf32>
    %16 = vector.shape_cast %15 : vector<1x1x1x256xf32> to vector<1x1x256xf32>
    %17 = arith.cmpf ogt, %16, %12 : vector<1x1x256xf32>
    %c3_i32 = arith.constant 3 : i32
    %18 = vector.broadcast %c3_i32 : i32 to vector<1x1x256xi32>
    %19 = arith.select %17, %18, %14 : vector<1x1x256xi1>, vector<1x1x256xi32>
    %c0_12 = arith.constant 0 : index
    %c0_13 = arith.constant 0 : index
    %c0_14 = arith.constant 0 : index
    %20 = vector.load %arg4[%c0_12, %c0_13, %c0_14] : memref<1x1x256xi32, #tpu.memory_space<vmem>>, vector<1x1x256xi32>
    tpu.vector_store %arg4[%c0_12, %c0_13, %c0_14], %19 {strides = array<i32>} : memref<1x1x256xi32, #tpu.memory_space<vmem>>, vector<1x1x256xi32>,
    return
  }
  func.func @transform_0(%arg0: i32, %arg1: i32, %arg2: i32) -> (i32, i32, i32, i32) {
    %c0_i32 = arith.constant 0 : i32
    %c0_i32_0 = arith.constant 0 : i32
    return %arg0, %c0_i32, %arg1, %arg2 : i32, i32, i32, i32
  }
  func.func @transform_1(%arg0: i32, %arg1: i32, %arg2: i32) -> (i32, i32, i32) {
    %c0_i32 = arith.constant 0 : i32
    return %arg0, %arg1, %arg2 : i32, i32, i32
  }
}

</mosaic_0001>

<bundles_post_ra>
// kernel: tpu_custom_call.1
= control target key start
LH: loop header
LB: loop body
LE: loop exit
PB: predicated region body
PF: predicated region fallthrough
CT: control target
= control target key end

     0   :  { %6 = vsyncpa [#allocation3], 0  ;;  %s627_s0 = inlined_call_operand.hbm [shape: f32[2,4,1,256], index: 0, kind: input, shape index: {}]   ;;  %s628_s1 = inlined_call_operand.hbm [shape: s32[2,1,256], index: 1, kind: output, shape index: {}]  }
   0x1   :  { %8 = vsyncpa [#allocation3 + $0x1], 0 }
   0x2   :  { %9 = vsyncpa [#allocation4], 0 }
   0x3   :  { %11 = vsyncpa [#allocation4 + $0x1], 0  ;;  %s506_s6 = smov 0   ;;  %s508_s7 = smov 0  }
   0x4   :  { %s510_s8 = smov 0   ;;  %s512_s9 = smov 0  }
   0x5   :  { %s514_s10 = smov 0   ;;  %s516_s11 = smov 0  }
   0x6 LB: > { %s298_s12 = sadd.s32 4294967295, %s491_s11   ;;  %s299_s13 = sadd.s32 4294967294, %s491_s11   ;;  %s491_s11 = sphi %s516_s11, %s17_s11   ;;  %s487_s10 = sphi %s514_s10, %s637_s10   ;;  %s483_s9 = sphi %s512_s9, %s636_s9   ;;  %s479_s8 = sphi %s510_s8, %s635_s8   ;;  %s475_s7 = sphi %s508_s7, %s634_s7   ;;  %s471_s6 = sphi %s506_s6, %s633_s6  }
   0x7   : > { %s36_s14 = sadd.s32 1, %s487_s10  ;;  %s47_s15 = sadd.s32 1, %s479_s8 }
   0x8   : > { %p38_p0 = scmp.ge.s32.totalorder %s36_s14, 2  ;;  %p54_p1 = scmp.ne.s32.totalorder %s479_s8, %s475_s7 }
   0x9   : > { %p55_p2 = scmp.eq.s32.totalorder %s491_s11, 0  ;;  %p60_p3 = scmp.ne.s32.totalorder %s475_s7, %s471_s6 }
   0xa   : > { %s639_s14 = smov (%p38_p0, %s36_s14), 0  ;;  %p61_p5 = scmp.eq.s32.totalorder %s298_s12, 0 }
   0xb   : > { %p547_p4 = por %p55_p2, %p54_p1  ;;  %s40_s17 = ssub.s32 %s487_s10, %s639_s14 }
   0xc   : > { %p88_p6 = scmp.eq.s32.totalorder %s298_s12, 1  ;;  %p45_p7 = scmp.eq.s32.totalorder %s40_s17, 0 }
   0xd   : > { %p553_p8 = por %p61_p5, %p60_p3  ;;  %p94_p10 = scmp.eq.s32.totalorder %s299_s13, 1 }
   0xe   : > { %p557_p9 = por %p88_p6, %p54_p1  ;;  %p301_p12 = scmp.ge.s32.totalorder %s491_s11, 2 }
   0xf   : > { %s562_s20 = scalar_select %p45_p7, %s479_s8, %s47_s15  }
  0x10   : > { %p564_p11 = por %p94_p10, %p60_p3  ;;  %p326_p13 = scmp.lt.s32.totalorder %s491_s11, 2 }
  0x11   : > { %s114_s22 = sand.u32 1, %s479_s8   ;;  %s303_s24 = sshll.u32 %s487_s10, 3 }
  0x12   : > { %s302_s23 = sshll.u32 %s114_s22, 3  ;;  %s126_s27 = scalar_lea.hbm %s627_s0, %s303_s24 }
  0x13   : > { %s118_s28 = scalar_lea.vmem [#allocation2], %s302_s23  ;;  %s127_s30 = sshll.u32 %s126_s27, 4  ;;  %s128_s30 = int_to_ptr.hbm [resolvable:$true] %s127_s30 }
  0x14   : > { %s129_s29 = sshll.u32 %s118_s28, 4  ;;  %p319_p0 = pnand %p326_p13, %p547_p4  ;;  %s130_s29 = int_to_ptr.vmem [resolvable:$true] %s129_s29 }
  0x15   : > { %p304_p1 = scmp.ge.s32.totalorder %s491_s11, 1  ;;  %s115_s2 = scalar_lea.sflag [#allocation3], %s114_s22 }
  0x16   : > { %s493_s3 = smov 32   ;;  %s494_s4 = smov 2  }
  0x17   : > { %321 = dma.hbm_to_vmem [thread:$0]  (!%p319_p0), %s128_s30, 128, %s130_s29, %s115_s2, %s493_s3, %s493_s3, %s494_s4  }
  0x18   : > { %p137_p2 = scmp.lt.s32.totalorder %s491_s11, 3 }
  0x1a   : > { %p138_p3 = pnand %p304_p1, %p137_p2 }
  0x1b   : > { %s580_s5 = sand.u32 (!%p138_p3), 1, %s475_s7  }
  0x1c   : > { %141 = sbr.rel (%p138_p3) target bundleno = 50 (0x32), region = 24  ;;  %s305_s12 = sshll.u32 (!%p138_p3), %s580_s5, 3 }
  0x1d   : > { %s144_s13 = scalar_lea.sflag (!%p138_p3), [#allocation3], %s580_s5  ;;  %s147_s15 = scalar_lea.vmem (!%p138_p3), [#allocation2], %s305_s12 }
  0x21   : > { %462 = dma.done.wait (%p553_p8), %s144_s13, 128  }
  0x22   : > { %464 = vsyncadd (%p553_p8), %s144_s13, 4294967168  ;;  %s306_s16 = sshll.u32 %s580_s5, 1  ;;  %s311_s17 = sshll.u32 %s483_s9, 1  ;;  %v169_v0 = vld [vmem:[%s147_s15] sm:$0x3]  ;;  %v184_v3 = vlaneseq  ;;  %v495_v5 = vmov 0  }
  0x23   : > { %s204_s24 = scalar_lea.hbm %s628_s1, %s311_s17  ;;  %v307_v1 = vld [vmem:[%s147_s15 + $0x2] sm:$0x3]  ;;  %v308_v2 = vld [vmem:[%s147_s15 + $0x4] sm:$0x3]  ;;  %v309_v7 = vld [vmem:[%s147_s15 + $0x6] sm:$0x3] }
  0x24   : > { %vm172_vm0 = vcmp.gt.f32.partialorder %v307_v1, %v169_v0  ;;  %s166_s18 = scalar_lea.vmem [#allocation5], %s306_s16  ;;  %s208_s26 = sshll.u32 %s204_s24, 4  ;;  %vm186_vm2 = vcmp.lt.s32.totalorder %v184_v3, 256  ;;  %s209_s26 = int_to_ptr.hbm [resolvable:$true] %s208_s26 }
  0x25   : > { %v173_v4 = vsel %vm172_vm0, %v307_v1, %v169_v0  ;;  %v174_v6 = vsel %vm172_vm0, 1, %v495_v5  ;;  %s206_s25 = sshll.u32 %s166_s18, 4  ;;  %s190_s9 = scalar_lea.sflag [#allocation4], %s580_s5  ;;  %s207_s25 = int_to_ptr.vmem [resolvable:$true] %s206_s25 }
  0x26   : > { %vm177_vm1 = vcmp.gt.f32.partialorder %v308_v2, %v173_v4  ;;  %s423_s27 = sshra.s32 %s209_s26, 4  ;;  %s429_s2 = scalar_lea.hbm %s628_s1, 4  ;;  %s424_s27 = int_to_ptr.hbm [resolvable:$true] %s423_s27 }
  0x27   : > { %v178_v8 = vsel %vm177_vm1, %v308_v2, %v173_v4  ;;  %v179_v9 = vsel %vm177_vm1, 2, %v174_v6  ;;  %s425_s28 = scalar_lea.hbm %s424_s27, 2  ;;  %p430_p7 = scmp.lt.s32.totalorder %s424_s27, %s628_s1 }
  0x28   : > { %vm182_vm3 = vcmp.gt.f32.partialorder %v309_v7, %v178_v8  ;;  %p426_p4 = scmp.ne.s32.totalorder %s424_s27, %s425_s28  ;;  %p431_p8 = scmp.lt.s32.totalorder %s429_s2, %s425_s28 }
  0x29   : > { %v183_v10 = vsel %vm182_vm3, 3, %v179_v9 }
  0x2a   : > { %188 = vst.msk [vmem:[%s166_s18] sm:$0x3] %vm186_vm2, %v183_v10  ;;  %p427_p5 = pnand %p426_p4, %p557_p9  ;;  %p432_p10 = por %p431_p8, %p430_p7 }
  0x2c   : > { %p428_p6 = pneg %p427_p5 }
  0x2e   : > { %p433_p13 = pnand %p432_p10, %p428_p6 }
  0x30   : > { %436 = shalt.err (!%p433_p13)
}
  0x31   : > { %316 = dma.vmem_to_hbm [thread:$0]  (%p557_p9), %s207_s25, 32, %s209_s26, %s190_s9  }
  0x32 PF: > { %s220_s5 = sand.u32 1, %s471_s6   ;;  %p323_p0 = pnand %p301_p12, %p564_p11 }
  0x33   : > { %s221_s12 = scalar_lea.sflag [#allocation4], %s220_s5 }
  0x34   : > { %p324_p1 = pneg %p323_p0 }
  0x36   : > { %466 = dma.done.wait (%p324_p1), %s221_s12, 32  }
  0x37   : > { %468 = vsyncadd (%p324_p1), %s221_s12, 4294967264  ;;  %s17_s11 = sadd.s32 1, %s491_s11   ;;  %s633_s6 = smov %s475_s7 }
  0x38   : > { %p14_p2 = scmp.ge.s32.totalorder %s17_s11, 4   ;;  %s634_s7 = smov %s479_s8 }
  0x39   : > { %s635_s8 = smov %s562_s20  ;;  %s636_s9 = smov %s487_s10 }
  0x3a   : > { %s637_s10 = smov %s639_s14  ;;  %16 = sbr.rel (!%p14_p2) target bundleno = 6 (0x6), region = 72 }
  0x3f   :  { %227 = vsyncpa [#allocation3], 1 }
  0x40   :  { %229 = vsyncpa [#allocation3 + $0x1], 1 }
  0x41   :  { %230 = vsyncpa [#allocation4], 1 }
  0x42   :  { %232 = vsyncpa [#allocation4 + $0x1], 1 }

</bundles_post_ra>
